<compile_context>
chip_gen: v5e
topology: v5e:2x2
jax: 0.10.0
libtpu: 0.0.40
codegen_flags: <defaults>
</compile_context>

<pallas_src>
import functools

import jax
import jax.numpy as jnp
from jax.experimental import pallas as pl
from jax.experimental.pallas import tpu as pltpu


# --------------------------- Pallas kernel -----------------------------------

def fused_down_kernel(xg_ref, m_ref, bz_ref, w1_ref, b1_ref, w2_ref, b2_ref,
                      out_ref, *, N, T_out, CV, P, maxpool):
    """Fused GCN + MaxPool1d(2) + (conv5x5 + BN + ReLU) x2 for the whole batch.

    xg_ref : (R, CinV_pad)  bf16   R = N*T rows (even/odd pre-split if maxpool)
    m_ref  : (CinV_pad, CV) bf16   folded 1x1-conv weight x adjacency (zero-padded rows)
    bz_ref : (1, CV)        f32    folded GCN bias
    w1/w2  : (5*CV, CV)     bf16   conv weight with V-shift + BN scale folded in
    b1/b2  : (1, CV)        f32    folded conv bias + BN shift
    out_ref: (N*T_out, CV)  f32
    """
    # --- GCN: batch folded into rows -> ONE MXU matmul for all samples ---
    z = jnp.dot(xg_ref[...], m_ref[...], preferred_element_type=jnp.float32)
    z = z + bz_ref[...]

    # --- MaxPool1d(2) over T: rows were pre-split [all-even | all-odd] in glue,
    #     so the pool is one contiguous half/half maximum (aligned, lane-dense) ---
    if maxpool:
        half = N * T_out
        z = jnp.maximum(z[:half, :], z[half:, :])

    def conv5x5_bn_relu(h, wf_ref, bf_ref):
        # Per-sample zero-padded time buffer (P rows, sublane-aligned); the 5 time
        # taps are XLU sublane rotations (pltpu.roll) + aligned [:T_out] slices;
        # the vertex (V) taps are already folded into the banded weight matrix.
        # Samples are then row-stacked so each conv is a SINGLE MXU contraction
        # (N*T_out, 5*CV) @ (5*CV, CV) for the whole batch.
        zeros_head = jnp.zeros((2, CV), jnp.float32)
        zeros_tail = jnp.zeros((P - T_out - 2, CV), jnp.float32)
        xcs = []
        for n in range(N):                                   # static unroll (N small)
            hn = h[n * T_out:(n + 1) * T_out, :]             # aligned row slice
            hp = jnp.concatenate([zeros_head, hn, zeros_tail], axis=0)   # (P, CV)
            taps = [hp] + [pltpu.roll(hp, shift=P - dt, axis=0)          # tap[t]=hp[t+dt]
                           for dt in range(1, 5)]
            xcs.append(jnp.concatenate(taps, axis=1)[:T_out, :])         # (T_out, 5*CV)
        xc = jnp.concatenate(xcs, axis=0)                                # (N*T_out, 5*CV)
        acc = jnp.dot(xc.astype(wf_ref.dtype), wf_ref[...],
                      preferred_element_type=jnp.float32)
        return jnp.maximum(acc + bf_ref[...], 0.0)           # conv bias + BN folded

    h = conv5x5_bn_relu(z, w1_ref, b1_ref)
    h = conv5x5_bn_relu(h, w2_ref, b2_ref)
    out_ref[...] = h.astype(out_ref.dtype)                   # one lane-dense store


# ------------------------------- glue ----------------------------------------

def _fold_conv_bn(w, b, gamma, beta, rmean, rvar, V, eps=1e-5):
    """Fold 5x5 conv weight (OIHW) + bias + inference BN into a banded matrix.

    Returns Wf (5*Cin*V, Cout*V) and bf (1, Cout*V) such that, with the kernel's
    (time-tap, channel, vertex) column layout, conv+bias+BN == xc @ Wf + bf.
    """
    Cout, Cin, KH, KW = w.shape
    s = gamma / jnp.sqrt(rvar + eps)
    shift = beta - rmean * s
    vv = jnp.arange(V)
    dv = jnp.arange(KW)
    # S[dv, vin, vout] = 1 iff vin == vout + dv - pad  (vertex-shift band)
    S = (vv[None, :, None] == (vv[None, None, :] + dv[:, None, None] - KW // 2))
    S = S.astype(w.dtype)
    Wf = jnp.einsum("oitd,dxy->tixoy", w, S)                 # (5, Cin, V, Cout, V)
    Wf = Wf * s[None, None, None, :, None]                   # fold BN scale
    Wf = Wf.reshape(KH * Cin * V, Cout * V)
    bf = b * s + shift                                       # (Cout,)
    bf = jnp.broadcast_to(bf[:, None], (Cout, V)).reshape(1, Cout * V)
    return Wf, bf


def fold_down_params(params, A, Cin, V, eps=1e-5):
    """Input-independent parameter folding.  Call ONCE per parameter set and
    reuse the result; this keeps the folding einsums/casts off the hot path."""
    K = A.shape[0]
    w_gcn, b_gcn = params["w_gcn"], params["b_gcn"]
    Cout = w_gcn.shape[0] // K
    CV = Cout * V
    CinV = Cin * V
    cvp = ((CinV + 127) // 128) * 128                        # pad LHS lanes to 128

    Wr = w_gcn.reshape(K, Cout, Cin)
    M = jnp.einsum("kci,kvw->ivcw", Wr, A).reshape(CinV, CV)
    if cvp != CinV:
        M = jnp.pad(M, ((0, cvp - CinV), (0, 0)))            # zero rows for padded lanes
    bz = jnp.einsum("kc,kvw->cw", b_gcn.reshape(K, Cout), A).reshape(1, CV)
    W1, b1 = _fold_conv_bn(params["w_conv1"], params["b_conv1"],
                           params["g1"], params["be1"], params["m1"], params["v1"],
                           V, eps)
    W2, b2 = _fold_conv_bn(params["w_conv2"], params["b_conv2"],
                           params["g2"], params["be2"], params["m2"], params["v2"],
                           V, eps)
    return {
        "M": M.astype(jnp.bfloat16), "bz": bz,
        "W1": W1.astype(jnp.bfloat16), "b1": b1,
        "W2": W2.astype(jnp.bfloat16), "b2": b2,
    }


@functools.partial(jax.jit, static_argnames=("maxpool",))
def down_forward(x, folded, maxpool=True):
    """Pallas implementation of down.forward(x, A, MaxPool) with pre-folded params.

    x: (N, Cin, T, V) float32.  Returns (x_out (N, Cout, T_out, V), x_pool (N, Cout, T_out)).
    """
    N, Cin, T, V = x.shape
    CinV = Cin * V
    Mb, bz = folded["M"], folded["bz"]
    W1b, b1, W2b, b2 = folded["W1"], folded["b1"], folded["W2"], folded["b2"]
    cvp, CV = Mb.shape
    Cout = CV // V

    # ---- activation layout prep (fuses into one XLA pass under jit) ----
    xg = jnp.transpose(x, (0, 2, 1, 3)).reshape(N, T, CinV)  # rows = (n, t)
    if maxpool:
        T_out = T // 2
        xg = xg[:, :2 * T_out]                               # PyTorch drops odd tail
        # rows become [all even steps (sample-major) | all odd steps] so the
        # in-kernel pool is one contiguous half/half maximum.
        xg = xg.reshape(N, T_out, 2, CinV).transpose(2, 0, 1, 3)
        xg = xg.reshape(2 * N * T_out, CinV)
    else:
        T_out = T
        xg = xg.reshape(N * T, CinV)
    if cvp != CinV:
        xg = jnp.pad(xg, ((0, 0), (0, cvp - CinV)))          # full-lane, unmasked feed
    xg = xg.astype(jnp.bfloat16)                             # bf16 MXU operand (f32 acc)

    P = ((T_out + 4 + 7) // 8) * 8                           # sublane-aligned padded rows
    kern = functools.partial(fused_down_kernel, N=N, T_out=T_out, CV=CV, P=P,
                             maxpool=maxpool)
    vmem = pl.BlockSpec(memory_space=pltpu.MemorySpace.VMEM)
    out = pl.pallas_call(                                    # single step, no grid
        kern,
        in_specs=[vmem] * 7,
        out_specs=vmem,
        out_shape=jax.ShapeDtypeStruct((N * T_out, CV), jnp.float32),
    )(xg, Mb, bz, W1b, b1, W2b, b2)

    # back to (N, Cout, T_out, V); the mean-over-V pool is done by XLA on the tiny
    # result (avoids a narrow, masked in-kernel store).
    x_out = out.reshape(N, T_out, Cout, V).transpose(0, 2, 1, 3)
    x_pool = jnp.mean(x_out, axis=-1)
    return x_out, x_pool


# -------------------------- pure-JAX reference -------------------------------

def ref_forward(x, A, p, maxpool, eps=1e-5):
    N, Cin, T, V = x.shape
    K = A.shape[0]
    Cout = p["w_gcn"].shape[0] // K
    y = jnp.einsum("oc,nctv->notv", p["w_gcn"], x) + p["b_gcn"][None, :, None, None]
    y = y.reshape(N, K, Cout, T, V)
    z = jnp.einsum("nkctv,kvw->nctw", y, A)
    if maxpool:
        z = z[:, :, :2 * (T // 2)]
        z = z.reshape(N, Cout, T // 2, 2, V).max(axis=3)

    def block(h, w, b, g, be, m, v):
        h = jax.lax.conv_general_dilated(
            h, w, window_strides=(1, 1), padding=((2, 2), (2, 2)),
            dimension_numbers=("NCHW", "OIHW", "NCHW"))
        h = h + b[None, :, None, None]
        s = g / jnp.sqrt(v + eps)
        h = (h - m[None, :, None, None]) * s[None, :, None, None] + be[None, :, None, None]
        return jnp.maximum(h, 0.0)

    h = block(z, p["w_conv1"], p["b_conv1"], p["g1"], p["be1"], p["m1"], p["v1"])
    h = block(h, p["w_conv2"], p["b_conv2"], p["g2"], p["be2"], p["m2"], p["v2"])
    return h, h.mean(axis=-1)


# --------------------------------- main ---------------------------------------

if __name__ == "__main__":
    key = jax.random.PRNGKey(0)
    N, Cin, Cout, T, V, K = 2, 4, 8, 16, 16, 3   # kernel_size = (5, 3) -> K = 3
    ks = jax.random.split(key, 12)

    x = jax.random.normal(ks[0], (N, Cin, T, V), jnp.float32)
    A = 0.2 * jax.random.normal(ks[1], (K, V, V), jnp.float32)

    params = {
        "w_gcn": 0.2 * jax.random.normal(ks[2], (K * Cout, Cin), jnp.float32),
        "b_gcn": 0.1 * jax.random.normal(ks[3], (K * Cout,), jnp.float32),
        "w_conv1": 0.1 * jax.random.normal(ks[4], (Cout, Cout, 5, 5), jnp.float32),
        "b_conv1": 0.1 * jax.random.normal(ks[5], (Cout,), jnp.float32),
        "g1": 1.0 + 0.1 * jax.random.normal(ks[6], (Cout,), jnp.float32),
        "be1": 0.1 * jax.random.normal(ks[7], (Cout,), jnp.float32),
        "m1": jnp.zeros((Cout,), jnp.float32),
        "v1": jnp.ones((Cout,), jnp.float32),
        "w_conv2": 0.1 * jax.random.normal(ks[8], (Cout, Cout, 5, 5), jnp.float32),
        "b_conv2": 0.1 * jax.random.normal(ks[9], (Cout,), jnp.float32),
        "g2": 1.0 + 0.1 * jax.random.normal(ks[10], (Cout,), jnp.float32),
        "be2": 0.1 * jax.random.normal(ks[11], (Cout,), jnp.float32),
        "m2": jnp.zeros((Cout,), jnp.float32),
        "v2": jnp.ones((Cout,), jnp.float32),
    }

    # parameter folding hoisted out of the hot path (done once per param set)
    folded = fold_down_params(params, A, Cin, V)

    for mp in (True, False):
        x_out, x_pool = down_forward(x, folded, maxpool=mp)
        x_out, x_pool = jax.block_until_ready((x_out, x_pool))

        rx, rp = ref_forward(x, A, params, mp)
        t_out = T // 2 if mp else T
        assert x_out.shape == (N, Cout, t_out, V)
        assert x_pool.shape == (N, Cout, t_out)
        assert jnp.allclose(x_out, rx, rtol=3e-2, atol=3e-2), (
            f"maxpool={mp} max err {jnp.abs(x_out - rx).max()}")
        assert jnp.allclose(x_pool, rp, rtol=3e-2, atol=3e-2), (
            f"maxpool={mp} pool max err {jnp.abs(x_pool - rp).max()}")

    print("KERNEL_OK")
</pallas_src>

<mosaic_0001>
module attributes {stable_mosaic.version = 11 : i64} {
  func.func @fused_down_kernel(%arg0: memref<32x128xbf16, #tpu.memory_space<vmem>>, %arg1: memref<128x128xbf16, #tpu.memory_space<vmem>>, %arg2: memref<1x128xf32, #tpu.memory_space<vmem>>, %arg3: memref<640x128xbf16, #tpu.memory_space<vmem>>, %arg4: memref<1x128xf32, #tpu.memory_space<vmem>>, %arg5: memref<640x128xbf16, #tpu.memory_space<vmem>>, %arg6: memref<1x128xf32, #tpu.memory_space<vmem>>, %arg7: memref<16x128xf32, #tpu.memory_space<vmem>>) attributes {dimension_semantics = [], scalar_prefetch = 0 : i64, scratch_operands = 0 : i64, tpu.core_type = #tpu.core_type<tc>} {
    %c0 = arith.constant 0 : index
    %c0_0 = arith.constant 0 : index
    %0 = vector.load %arg0[%c0, %c0_0] : memref<32x128xbf16, #tpu.memory_space<vmem>>, vector<32x128xbf16>
    %c0_1 = arith.constant 0 : index
    %c0_2 = arith.constant 0 : index
    %1 = vector.load %arg1[%c0_1, %c0_2] : memref<128x128xbf16, #tpu.memory_space<vmem>>, vector<128x128xbf16>
    %cst = arith.constant dense<0.000000e+00> : vector<32x128xf32>
    %2 = tpu.matmul %0, %1, %cst {dimension_numbers = #tpu.dot_dimension_numbers<[1], [0], [0], [1], [0, 0, 1, 1], [], []>} : vector<32x128xbf16>, vector<128x128xbf16>, vector<32x128xf32> -> vector<32x128xf32>
    %c0_3 = arith.constant 0 : index
    %c0_4 = arith.constant 0 : index
    %3 = vector.load %arg2[%c0_3, %c0_4] : memref<1x128xf32, #tpu.memory_space<vmem>>, vector<1x128xf32>
    %4 = vector.broadcast %3 : vector<1x128xf32> to vector<32x128xf32>
    %5 = arith.addf %2, %4 : vector<32x128xf32>
    %6 = vector.extract_strided_slice %5 {offsets = [0, 0], sizes = [16, 128], strides = [1, 1]} : vector<32x128xf32> to vector<16x128xf32>
    %7 = vector.extract_strided_slice %5 {offsets = [16, 0], sizes = [16, 128], strides = [1, 1]} : vector<32x128xf32> to vector<16x128xf32>
    %8 = arith.maximumf %6, %7 : vector<16x128xf32>
    %cst_5 = arith.constant 0.000000e+00 : f32
    %9 = vector.broadcast %cst_5 : f32 to vector<2x128xf32>
    %cst_6 = arith.constant 0.000000e+00 : f32
    %10 = vector.broadcast %cst_6 : f32 to vector<6x128xf32>
    %11 = vector.extract_strided_slice %8 {offsets = [0, 0], sizes = [8, 128], strides = [1, 1]} : vector<16x128xf32> to vector<8x128xf32>
    %12 = tpu.concatenate %9, %11, %10 in 0 : vector<2x128xf32>, vector<8x128xf32>, vector<6x128xf32> -> vector<16x128xf32>
    %c15_i32 = arith.constant 15 : i32
    %13 = tpu.dynamic_rotate %12 by %c15_i32 dim 0 : vector<16x128xf32>, i32 -> vector<16x128xf32>
    %c14_i32 = arith.constant 14 : i32
    %14 = tpu.dynamic_rotate %12 by %c14_i32 dim 0 : vector<16x128xf32>, i32 -> vector<16x128xf32>
    %c13_i32 = arith.constant 13 : i32
    %15 = tpu.dynamic_rotate %12 by %c13_i32 dim 0 : vector<16x128xf32>, i32 -> vector<16x128xf32>
    %c12_i32 = arith.constant 12 : i32
    %16 = tpu.dynamic_rotate %12 by %c12_i32 dim 0 : vector<16x128xf32>, i32 -> vector<16x128xf32>
    %17 = tpu.concatenate %12, %13, %14, %15, %16 in 1 : vector<16x128xf32>, vector<16x128xf32>, vector<16x128xf32>, vector<16x128xf32>, vector<16x128xf32> -> vector<16x640xf32>
    %18 = vector.extract_strided_slice %17 {offsets = [0, 0], sizes = [8, 640], strides = [1, 1]} : vector<16x640xf32> to vector<8x640xf32>
    %19 = vector.extract_strided_slice %8 {offsets = [8, 0], sizes = [8, 128], strides = [1, 1]} : vector<16x128xf32> to vector<8x128xf32>
    %20 = tpu.concatenate %9, %19, %10 in 0 : vector<2x128xf32>, vector<8x128xf32>, vector<6x128xf32> -> vector<16x128xf32>
    %c15_i32_7 = arith.constant 15 : i32
    %21 = tpu.dynamic_rotate %20 by %c15_i32_7 dim 0 : vector<16x128xf32>, i32 -> vector<16x128xf32>
    %c14_i32_8 = arith.constant 14 : i32
    %22 = tpu.dynamic_rotate %20 by %c14_i32_8 dim 0 : vector<16x128xf32>, i32 -> vector<16x128xf32>
    %c13_i32_9 = arith.constant 13 : i32
    %23 = tpu.dynamic_rotate %20 by %c13_i32_9 dim 0 : vector<16x128xf32>, i32 -> vector<16x128xf32>
    %c12_i32_10 = arith.constant 12 : i32
    %24 = tpu.dynamic_rotate %20 by %c12_i32_10 dim 0 : vector<16x128xf32>, i32 -> vector<16x128xf32>
    %25 = tpu.concatenate %20, %21, %22, %23, %24 in 1 : vector<16x128xf32>, vector<16x128xf32>, vector<16x128xf32>, vector<16x128xf32>, vector<16x128xf32> -> vector<16x640xf32>
    %26 = vector.extract_strided_slice %25 {offsets = [0, 0], sizes = [8, 640], strides = [1, 1]} : vector<16x640xf32> to vector<8x640xf32>
    %27 = tpu.concatenate %18, %26 in 0 : vector<8x640xf32>, vector<8x640xf32> -> vector<16x640xf32>
    %28 = arith.truncf %27 : vector<16x640xf32> to vector<16x640xbf16>
    %c0_11 = arith.constant 0 : index
    %c0_12 = arith.constant 0 : index
    %29 = vector.load %arg3[%c0_11, %c0_12] : memref<640x128xbf16, #tpu.memory_space<vmem>>, vector<640x128xbf16>
    %cst_13 = arith.constant dense<0.000000e+00> : vector<16x128xf32>
    %30 = tpu.matmul %28, %29, %cst_13 {dimension_numbers = #tpu.dot_dimension_numbers<[1], [0], [0], [1], [0, 0, 1, 1], [], []>} : vector<16x640xbf16>, vector<640x128xbf16>, vector<16x128xf32> -> vector<16x128xf32>
    %c0_14 = arith.constant 0 : index
    %c0_15 = arith.constant 0 : index
    %31 = vector.load %arg4[%c0_14, %c0_15] : memref<1x128xf32, #tpu.memory_space<vmem>>, vector<1x128xf32>
    %32 = vector.broadcast %31 : vector<1x128xf32> to vector<16x128xf32>
    %33 = arith.addf %30, %32 : vector<16x128xf32>
    %cst_16 = arith.constant 0.000000e+00 : f32
    %34 = vector.broadcast %cst_16 : f32 to vector<16x128xf32>
    %35 = arith.maximumf %33, %34 : vector<16x128xf32>
    %cst_17 = arith.constant 0.000000e+00 : f32
    %36 = vector.broadcast %cst_17 : f32 to vector<2x128xf32>
    %cst_18 = arith.constant 0.000000e+00 : f32
    %37 = vector.broadcast %cst_18 : f32 to vector<6x128xf32>
    %38 = vector.extract_strided_slice %35 {offsets = [0, 0], sizes = [8, 128], strides = [1, 1]} : vector<16x128xf32> to vector<8x128xf32>
    %39 = tpu.concatenate %36, %38, %37 in 0 : vector<2x128xf32>, vector<8x128xf32>, vector<6x128xf32> -> vector<16x128xf32>
    %c15_i32_19 = arith.constant 15 : i32
    %40 = tpu.dynamic_rotate %39 by %c15_i32_19 dim 0 : vector<16x128xf32>, i32 -> vector<16x128xf32>
    %c14_i32_20 = arith.constant 14 : i32
    %41 = tpu.dynamic_rotate %39 by %c14_i32_20 dim 0 : vector<16x128xf32>, i32 -> vector<16x128xf32>
    %c13_i32_21 = arith.constant 13 : i32
    %42 = tpu.dynamic_rotate %39 by %c13_i32_21 dim 0 : vector<16x128xf32>, i32 -> vector<16x128xf32>
    %c12_i32_22 = arith.constant 12 : i32
    %43 = tpu.dynamic_rotate %39 by %c12_i32_22 dim 0 : vector<16x128xf32>, i32 -> vector<16x128xf32>
    %44 = tpu.concatenate %39, %40, %41, %42, %43 in 1 : vector<16x128xf32>, vector<16x128xf32>, vector<16x128xf32>, vector<16x128xf32>, vector<16x128xf32> -> vector<16x640xf32>
    %45 = vector.extract_strided_slice %44 {offsets = [0, 0], sizes = [8, 640], strides = [1, 1]} : vector<16x640xf32> to vector<8x640xf32>
    %46 = vector.extract_strided_slice %35 {offsets = [8, 0], sizes = [8, 128], strides = [1, 1]} : vector<16x128xf32> to vector<8x128xf32>
    %47 = tpu.concatenate %36, %46, %37 in 0 : vector<2x128xf32>, vector<8x128xf32>, vector<6x128xf32> -> vector<16x128xf32>
    %c15_i32_23 = arith.constant 15 : i32
    %48 = tpu.dynamic_rotate %47 by %c15_i32_23 dim 0 : vector<16x128xf32>, i32 -> vector<16x128xf32>
    %c14_i32_24 = arith.constant 14 : i32
    %49 = tpu.dynamic_rotate %47 by %c14_i32_24 dim 0 : vector<16x128xf32>, i32 -> vector<16x128xf32>
    %c13_i32_25 = arith.constant 13 : i32
    %50 = tpu.dynamic_rotate %47 by %c13_i32_25 dim 0 : vector<16x128xf32>, i32 -> vector<16x128xf32>
    %c12_i32_26 = arith.constant 12 : i32
    %51 = tpu.dynamic_rotate %47 by %c12_i32_26 dim 0 : vector<16x128xf32>, i32 -> vector<16x128xf32>
    %52 = tpu.concatenate %47, %48, %49, %50, %51 in 1 : vector<16x128xf32>, vector<16x128xf32>, vector<16x128xf32>, vector<16x128xf32>, vector<16x128xf32> -> vector<16x640xf32>
    %53 = vector.extract_strided_slice %52 {offsets = [0, 0], sizes = [8, 640], strides = [1, 1]} : vector<16x640xf32> to vector<8x640xf32>
    %54 = tpu.concatenate %45, %53 in 0 : vector<8x640xf32>, vector<8x640xf32> -> vector<16x640xf32>
    %55 = arith.truncf %54 : vector<16x640xf32> to vector<16x640xbf16>
    %c0_27 = arith.constant 0 : index
    %c0_28 = arith.constant 0 : index
    %56 = vector.load %arg5[%c0_27, %c0_28] : memref<640x128xbf16, #tpu.memory_space<vmem>>, vector<640x128xbf16>
    %cst_29 = arith.constant dense<0.000000e+00> : vector<16x128xf32>
    %57 = tpu.matmul %55, %56, %cst_29 {dimension_numbers = #tpu.dot_dimension_numbers<[1], [0], [0], [1], [0, 0, 1, 1], [], []>} : vector<16x640xbf16>, vector<640x128xbf16>, vector<16x128xf32> -> vector<16x128xf32>
    %c0_30 = arith.constant 0 : index
    %c0_31 = arith.constant 0 : index
    %58 = vector.load %arg6[%c0_30, %c0_31] : memref<1x128xf32, #tpu.memory_space<vmem>>, vector<1x128xf32>
    %59 = vector.broadcast %58 : vector<1x128xf32> to vector<16x128xf32>
    %60 = arith.addf %57, %59 : vector<16x128xf32>
    %cst_32 = arith.constant 0.000000e+00 : f32
    %61 = vector.broadcast %cst_32 : f32 to vector<16x128xf32>
    %62 = arith.maximumf %60, %61 : vector<16x128xf32>
    %c0_33 = arith.constant 0 : index
    %c0_34 = arith.constant 0 : index
    %63 = vector.load %arg7[%c0_33, %c0_34] : memref<16x128xf32, #tpu.memory_space<vmem>>, vector<16x128xf32>
    tpu.vector_store %arg7[%c0_33, %c0_34], %62 {strides = array<i32>} : memref<16x128xf32, #tpu.memory_space<vmem>>, vector<16x128xf32>,
    return
  }
}

</mosaic_0001>

<bundles_post_ra>
// kernel: down_forward.1
= control target key start
LH: loop header
LB: loop body
LE: loop exit
PB: predicated region body
PF: predicated region fallthrough
CT: control target
= control target key end

     0   :  { %12 = vsyncpa [#allocation3], 0  ;;  %s1523_s27 = smov [#allocation2]   ;;  %s1524_s29 = smov 64   ;;  %s1798_s0 = inlined_call_operand.vmem [shape: bf16[32,128], index: 0, kind: input, shape index: {}]   ;;  %s1799_s1 = inlined_call_operand.vmem [shape: bf16[128,128], index: 1, kind: input, shape index: {}]   ;;  %s1800_s2 = inlined_call_operand.vmem [shape: f32[1,128], index: 2, kind: input, shape index: {}]   ;;  %s1801_s3 = inlined_call_operand.vmem [shape: bf16[640,128], index: 3, kind: input, shape index: {}]   ;;  %s1802_s4 = inlined_call_operand.vmem [shape: f32[1,128], index: 4, kind: input, shape index: {}]   ;;  %s1803_s5 = inlined_call_operand.hbm [shape: bf16[640,128], index: 5, kind: input, shape index: {}]   ;;  %s1804_s6 = inlined_call_operand.vmem [shape: f32[1,128], index: 6, kind: input, shape index: {}]   ;;  %s1805_s7 = inlined_call_operand.vmem [shape: f32[16,128], index: 7, kind: output, shape index: {}]  }
   0x1   :  { %s27_s26 = sshll.u32 %s1803_s5, 4  ;;  %s29_s28 = sshll.u32 %s1523_s27, 4  ;;  %s28_s26 = int_to_ptr.hbm [resolvable:$true] %s27_s26  ;;  %s30_s28 = int_to_ptr.vmem [resolvable:$true] %s29_s28 }
   0x2   :  { %s1525_s30 = smov 4  }
   0x3   :  { %35 = dma.hbm_to_vmem [thread:$0]  %s28_s26, 5120, %s30_s28, [#allocation3], %s1524_s29, %s1524_s29, %s1525_s30  }
   0x4   :  { %1521 = dma.done.wait [#allocation3], 5120  }
   0x5   :  { %1522 = vsyncadd [#allocation3], 4294962176  ;;  %v1410_v0 = vld [vmem:[%s1799_s1 + $0x38] sm:$0xff]  ;;  %v1409_v1 = vld [vmem:[%s1799_s1 + $0x30] sm:$0xff]  ;;  %v155_v59 = vlaneseq  ;;  %vm150_vm0 = vcmask 1041408  }
   0x6   :  { %126 = vmatpush.bf16.msra.mxu0 %v1410_v0  ;;  %v1408_v2 = vld [vmem:[%s1799_s1 + $0x28] sm:$0xff]  ;;  %v1407_v3 = vld [vmem:[%s1799_s1 + $0x20] sm:$0xff]  ;;  %v1406_v4 = vld [vmem:[%s1799_s1 + $0x18] sm:$0xff] }
   0x7   :  { %v1418_v5 = vld [vmem:[%s1801_s3 + $0x38] sm:$0xff]  ;;  %v1405_v6 = vld [vmem:[%s1799_s1 + $0x10] sm:$0xff]  ;;  %v1404_v8 = vld [vmem:[%s1799_s1 + $0x8] sm:$0xff]  ;;  %v1722_v63 = vshrl.u32 %v155_v59, 7 }
   0x8   :  { %517 = vmatpush.bf16.msra.mxu1 %v1418_v5  ;;  %v1417_v7 = vld [vmem:[%s1801_s3 + $0x30] sm:$0xff]  ;;  %v1416_v9 = vld [vmem:[%s1801_s3 + $0x28] sm:$0xff]  ;;  %v1403_v10 = vld [vmem:[%s1799_s1] sm:$0xff] }
   0x9   :  { %v1401_v11 = vld [vmem:[%s1798_s0] sm:$0xff]  ;;  %v1402_v12 = vld [vmem:[%s1798_s0 + $0x8] sm:$0xff]  ;;  %v1414_v14 = vld [vmem:[%s1801_s3 + $0x18] sm:$0xff]  ;;  %vm157_vm2 = vcmp.lt.s32.totalorder %v1722_v63, 7  ;;  %vm161_vm3 = vcmp.lt.s32.totalorder %v1722_v63, 6  ;;  %vm165_vm4 = vcmp.lt.s32.totalorder %v1722_v63, 5 }
   0xa   :  { %127 = vmatpush.bf16.msra.mxu0 %v1409_v1  ;;  %v1415_v13 = vld [vmem:[%s1801_s3 + $0x20] sm:$0xff]  ;;  %v1426_v15 = vld [vmem:[%s1801_s3 + $0x78] sm:$0xff]  ;;  %v1413_v18 = vld [vmem:[%s1801_s3 + $0x10] sm:$0xff]  ;;  %vm169_vm6 = vcmp.lt.s32.totalorder %v1722_v63, 4 }
   0xb   :  { %v1434_v16 = vld [vmem:[%s1801_s3 + $0xb8] sm:$0xff]  ;;  %531 = vmatpush.bf16.msra.mxu2 %v1426_v15  ;;  %v1425_v19 = vld [vmem:[%s1801_s3 + $0x70] sm:$0xff]  ;;  %v1412_v22 = vld [vmem:[%s1801_s3 + $0x8] sm:$0xff] }
   0xc   :  { %518 = vmatpush.bf16.msra.mxu1 %v1417_v7  ;;  %v1442_v17 = vld [vmem:[%s1801_s3 + $0xf8] sm:$0xff]  ;;  %545 = vmatpush.bf16.msra.mxu3 %v1434_v16  ;;  %v1433_v20 = vld [vmem:[%s1801_s3 + $0xb0] sm:$0xff]  ;;  %v1424_v23 = vld [vmem:[%s1801_s3 + $0x68] sm:$0xff] }
   0xd   :  { %v1441_v21 = vld [vmem:[%s1801_s3 + $0xf0] sm:$0xff]  ;;  %v1432_v24 = vld [vmem:[%s1801_s3 + $0xa8] sm:$0xff]  ;;  %v1411_v26 = vld [vmem:[%s1801_s3] sm:$0xff] }
   0xe   :  { %128 = vmatpush.bf16.msra.mxu0 %v1408_v2  ;;  %v1440_v25 = vld [vmem:[%s1801_s3 + $0xe8] sm:$0xff]  ;;  %v1423_v27 = vld [vmem:[%s1801_s3 + $0x60] sm:$0xff]  ;;  %v1450_v30 = vld [vmem:[%s1801_s3 + $0x138] sm:$0xff] }
   0xf   :  { %532 = vmatpush.bf16.msra.mxu2 %v1425_v19  ;;  %v1431_v28 = vld [vmem:[%s1801_s3 + $0xa0] sm:$0xff]  ;;  %v1422_v31 = vld [vmem:[%s1801_s3 + $0x58] sm:$0xff]  ;;  %v1449_v34 = vld [vmem:[%s1801_s3 + $0x130] sm:$0xff] }
  0x10   :  { %519 = vmatpush.bf16.msra.mxu1 %v1416_v9  ;;  %546 = vmatpush.bf16.msra.mxu3 %v1433_v20  ;;  %v1439_v29 = vld [vmem:[%s1801_s3 + $0xe0] sm:$0xff]  ;;  %v1430_v32 = vld [vmem:[%s1801_s3 + $0x98] sm:$0xff]  ;;  %v1421_v35 = vld [vmem:[%s1801_s3 + $0x50] sm:$0xff] }
  0x11   :  { %v1438_v33 = vld [vmem:[%s1801_s3 + $0xd8] sm:$0xff]  ;;  %v1429_v36 = vld [vmem:[%s1801_s3 + $0x90] sm:$0xff]  ;;  %v1448_v38 = vld [vmem:[%s1801_s3 + $0x128] sm:$0xff] }
  0x12   :  { %129 = vmatpush.bf16.msra.mxu0 %v1407_v3  ;;  %v1437_v37 = vld [vmem:[%s1801_s3 + $0xd0] sm:$0xff]  ;;  %v1420_v39 = vld [vmem:[%s1801_s3 + $0x48] sm:$0xff]  ;;  %v1447_v42 = vld [vmem:[%s1801_s3 + $0x120] sm:$0xff] }
  0x13   :  { %533 = vmatpush.bf16.msra.mxu2 %v1424_v23  ;;  %v1428_v40 = vld [vmem:[%s1801_s3 + $0x88] sm:$0xff]  ;;  %v1419_v44 = vld [vmem:[%s1801_s3 + $0x40] sm:$0xff]  ;;  %v1446_v47 = vld [vmem:[%s1801_s3 + $0x118] sm:$0xff] }
  0x14   :  { %520 = vmatpush.bf16.msra.mxu1 %v1415_v13  ;;  %547 = vmatpush.bf16.msra.mxu3 %v1432_v24  ;;  %v1436_v41 = vld [vmem:[%s1801_s3 + $0xc8] sm:$0xff]  ;;  %v1427_v45 = vld [vmem:[%s1801_s3 + $0x80] sm:$0xff]  ;;  %v1445_v48 = vld [vmem:[%s1801_s3 + $0x110] sm:$0xff] }
  0x15   :  { %v1435_v46 = vld [vmem:[%s1801_s3 + $0xc0] sm:$0xff]  ;;  %v1444_v49 = vld [vmem:[%s1801_s3 + $0x108] sm:$0xff]  ;;  %v1458_v56 = vld [vmem:[#allocation2 + $0x38] sm:$0xff] }
  0x16   :  { %130 = vmatpush.bf16.msra.mxu0 %v1406_v4  ;;  %v1443_v51 = vld [vmem:[%s1801_s3 + $0x100] sm:$0xff]  ;;  %v1457_v58 = vld [vmem:[#allocation2 + $0x30] sm:$0xff]  ;;  %v1456_v61 = vld [vmem:[#allocation2 + $0x28] sm:$0xff] }
  0x17   :  { %534 = vmatpush.bf16.msra.mxu2 %v1423_v27  ;;  %v1494_v52 = vld [vmem:[%s1800_s2] ss:$0 sm:$0xff]  ;;  %vm1727_vm1 = vmneg %vm150_vm0  ;;  %v1489_v59 = vld [vmem:[#allocation2 + $0x130] sm:$0xff] }
  0x18   :  { %521 = vmatpush.bf16.msra.mxu1 %v1414_v14  ;;  %548 = vmatpush.bf16.msra.mxu3 %v1431_v28  ;;  %vm1233_vm5 = vmpackc.low %vm1727_vm1, %vm1727_vm1 }
  0x1a   :  { %131 = vmatpush.bf16.msra.mxu0 %v1405_v6 }
  0x1b   :  { %535 = vmatpush.bf16.msra.mxu2 %v1422_v31 }
  0x1c   :  { %522 = vmatpush.bf16.msra.mxu1 %v1413_v18  ;;  %549 = vmatpush.bf16.msra.mxu3 %v1430_v32 }
  0x1e   :  { %132 = vmatpush.bf16.msra.mxu0 %v1404_v8 }
  0x1f   :  { %536 = vmatpush.bf16.msra.mxu2 %v1421_v35 }
  0x20   :  { %523 = vmatpush.bf16.msra.mxu1 %v1412_v22  ;;  %550 = vmatpush.bf16.msra.mxu3 %v1429_v36 }
  0x22   :  { %133 = vmatpush.bf16.msra.mxu0 %v1403_v10 }
  0x23   :  { %537 = vmatpush.bf16.msra.mxu2 %v1420_v39  ;;  %v1454_v39 = vld [vmem:[#allocation2 + $0x18] sm:$0xff] }
  0x24   :  { %524 = vmatpush.bf16.msra.mxu1 %v1411_v26  ;;  %551 = vmatpush.bf16.msra.mxu3 %v1428_v40  ;;  %v1466_v40 = vld [vmem:[#allocation2 + $0x78] sm:$0xff] }
  0x25   :  { %134 = vmatmul.bf16.vlgmr.msra.gmra.mxu0 %v1401_v11 }
  0x26   :  { %559 = vmatpush.bf16.msrb.mxu0 %v1442_v17 }
  0x27   :  { %538 = vmatpush.bf16.msra.mxu2 %v1419_v44  ;;  %v1465_v44 = vld [vmem:[#allocation2 + $0x70] sm:$0xff] }
  0x28   :  { %573 = vmatpush.bf16.msrb.mxu1 %v1450_v30  ;;  %552 = vmatpush.bf16.msra.mxu3 %v1427_v45  ;;  %v1473_v45 = vld [vmem:[#allocation2 + $0xb0] sm:$0xff] }
  0x2a   :  { %560 = vmatpush.bf16.msrb.mxu0 %v1441_v21 }
  0x2b   :  { %952 = vmatpush.bf16.msrb.mxu2 %v1458_v56  ;;  %v1462_v56 = vld [vmem:[#allocation2 + $0x58] sm:$0xff] }
  0x2c   :  { %574 = vmatpush.bf16.msrb.mxu1 %v1449_v34  ;;  %966 = vmatpush.bf16.msrb.mxu3 %v1466_v40 }
  0x2e   :  { %561 = vmatpush.bf16.msrb.mxu0 %v1440_v25 }
  0x2f   :  { %953 = vmatpush.bf16.msrb.mxu2 %v1457_v58  ;;  %v1478_v58 = vld [vmem:[#allocation2 + $0xd8] sm:$0xff] }
  0x30   :  { %575 = vmatpush.bf16.msrb.mxu1 %v1448_v38  ;;  %v1455_v38 = vld [vmem:[#allocation2 + $0x20] sm:$0xff]  ;;  %967 = vmatpush.bf16.msrb.mxu3 %v1465_v44 }
  0x32   :  { %562 = vmatpush.bf16.msrb.mxu0 %v1439_v29 }
  0x33   :  { %954 = vmatpush.bf16.msrb.mxu2 %v1456_v61  ;;  %v1469_v61 = vld [vmem:[#allocation2 + $0x90] sm:$0xff] }
  0x34   :  { %576 = vmatpush.bf16.msrb.mxu1 %v1447_v42  ;;  %v1482_v42 = vld [vmem:[#allocation2 + $0xf8] sm:$0xff] }
  0x35   :  { %139 = vmatmul.bf16.gmra.mxu0 %v1402_v12 }
  0x36   :  { %563 = vmatpush.bf16.msrb.mxu0 %v1438_v33 }
  0x37   :  { %955 = vmatpush.bf16.msrb.mxu2 %v1455_v38 }
  0x38   :  { %577 = vmatpush.bf16.msrb.mxu1 %v1446_v47  ;;  %v1452_v47 = vld [vmem:[#allocation2 + $0x8] sm:$0xff] }
  0x3a   :  { %564 = vmatpush.bf16.msrb.mxu0 %v1437_v37 }
  0x3b   :  { %956 = vmatpush.bf16.msrb.mxu2 %v1454_v39 }
  0x3c   :  { %578 = vmatpush.bf16.msrb.mxu1 %v1445_v48  ;;  %v1464_v48 = vld [vmem:[#allocation2 + $0x68] sm:$0xff] }
  0x3d   :  { %968 = vmatpush.bf16.msrb.mxu3 %v1464_v48 }
  0x3e   :  { %565 = vmatpush.bf16.msrb.mxu0 %v1436_v41  ;;  %v1474_v41 = vld [vmem:[#allocation2 + $0xb8] sm:$0xff] }
  0x40   :  { %579 = vmatpush.bf16.msrb.mxu1 %v1444_v49  ;;  %v1472_v49 = vld [vmem:[#allocation2 + $0xa8] sm:$0xff] }
  0x42   :  { %566 = vmatpush.bf16.msrb.mxu0 %v1435_v46  ;;  %v1481_v46 = vld [vmem:[#allocation2 + $0xf0] sm:$0xff] }
  0x44   :  { %580 = vmatpush.bf16.msrb.mxu1 %v1443_v51  ;;  %v1451_v51 = vld [vmem:[#allocation2] sm:$0xff] }
  0x46   :  { %980 = vmatpush.bf16.msra.mxu0 %v1474_v41 }
  0x4a   :  { %981 = vmatpush.bf16.msra.mxu0 %v1473_v45 }
  0x4e   :  { %982 = vmatpush.bf16.msra.mxu0 %v1472_v49 }
  0xa2   :  { %v135_v43 = vpop.f32.mrf.mxu0 }
  0xa3   :  { %v136_v54 = vadd.f32 %v1494_v52, %v135_v43  ;;  %v1453_v43 = vld [vmem:[#allocation2 + $0x10] sm:$0xff] }
  0xa4   :  { %957 = vmatpush.bf16.msrb.mxu2 %v1453_v43 }
  0xa8   :  { %958 = vmatpush.bf16.msrb.mxu2 %v1452_v47 }
  0xaa   :  { %v137_v50 = vpop.f32.mrf.mxu0 }
  0xab   :  { %v138_v0 = vadd.f32 %v1494_v52, %v137_v50  ;;  %v1480_v50 = vld [vmem:[#allocation2 + $0xe8] sm:$0xff] }
  0xac   :  { %959 = vmatpush.bf16.msrb.mxu2 %v1451_v51 }
  0xb2   :  { %v140_v53 = vpop.f32.mrf.mxu0 }
  0xb3   :  { %v141_v55 = vadd.f32 %v1494_v52, %v140_v53  ;;  %v1471_v53 = vld [vmem:[#allocation2 + $0xa0] sm:$0xff] }
  0xb4   :  { %983 = vmatpush.bf16.msra.mxu0 %v1471_v53 }
  0xb5   :  { %v145_v57 = vmax.f32 %v136_v54, %v141_v55  ;;  %v1479_v54 = vld [vmem:[#allocation2 + $0xe0] sm:$0xff]  ;;  %v1490_v55 = vld [vmem:[#allocation2 + $0x138] sm:$0xff] }
  0xb7   :  { %v148_v60 = vrot.slane %v145_v57, 6  ;;  %v1470_v57 = vld [vmem:[#allocation2 + $0x98] sm:$0xff] }
  0xb8   :  { %984 = vmatpush.bf16.msra.mxu0 %v1470_v57 }
  0xb9   :  { %v151_v2 = vsel %vm150_vm0, 0.0, %v148_v60  ;;  %v152_v3 = vsel %vm150_vm0, %v148_v60, 0.0 }
  0xba   :  { %v142_v62 = vpop.f32.mrf.mxu0  ;;  %v153_v7 = vrot.slane %v151_v2, 1  ;;  %v154_v8 = vrot.slane %v152_v3, 1  ;;  %v159_v9 = vrot.slane %v151_v2, 2  ;;  %v160_v10 = vrot.slane %v152_v3, 2 }
  0xbb   :  { %v143_v1 = vadd.f32 %v1494_v52, %v142_v62  ;;  %v163_v11 = vrot.slane %v151_v2, 3  ;;  %v164_v15 = vrot.slane %v152_v3, 3  ;;  %v167_v33 = vrot.slane %v151_v2, 4  ;;  %v1463_v52 = vld [vmem:[#allocation2 + $0x60] sm:$0xff]  ;;  %v1477_v62 = vld [vmem:[#allocation2 + $0xd0] sm:$0xff]  ;;  %v1468_v2 = vld [vmem:[#allocation2 + $0x88] sm:$0xff] }
  0xbc   :  { %v158_v22 = vsel %vm157_vm2, %v153_v7, %v154_v8  ;;  %v162_v24 = vsel %vm161_vm3, %v159_v9, %v160_v10  ;;  %v168_v34 = vrot.slane %v152_v3, 4  ;;  %969 = vmatpush.bf16.msrb.mxu3 %v1463_v52  ;;  %985 = vmatpush.bf16.msra.mxu0 %v1469_v61  ;;  %v1476_v3 = vld [vmem:[#allocation2 + $0xc8] sm:$0xff]  ;;  %v1459_v7 = vld [vmem:[#allocation2 + $0x40] sm:$0xff]  ;;  %v1486_v10 = vld [vmem:[#allocation2 + $0x118] sm:$0xff] }
  0xbd   :  { %v146_v4 = vmax.f32 %v138_v0, %v143_v1  ;;  %v166_v28 = vsel %vm165_vm4, %v163_v11, %v164_v15  ;;  %v1488_v0 = vld [vmem:[#allocation2 + $0x128] sm:$0xff]  ;;  %v1467_v8 = vld [vmem:[#allocation2 + $0x80] sm:$0xff] }
  0xbe   :  { %v170_v36 = vsel %vm169_vm6, %v167_v33, %v168_v34  ;;  %v1460_v1 = vld [vmem:[#allocation2 + $0x48] sm:$0xff]  ;;  %v1475_v9 = vld [vmem:[#allocation2 + $0xc0] sm:$0xff] }
  0xbf   :  { %v172_v6 = vrot.slane %v146_v4, 6  ;;  %v1487_v4 = vld [vmem:[#allocation2 + $0x120] sm:$0xff]  ;;  %v1484_v15 = vld [vmem:[#allocation2 + $0x108] sm:$0xff] }
  0xc0   :  { %970 = vmatpush.bf16.msrb.mxu3 %v1462_v56  ;;  %986 = vmatpush.bf16.msra.mxu0 %v1468_v2  ;;  %v1495_v11 = vld [vmem:[%s1802_s4] ss:$0 sm:$0xff] }
  0xc1   :  { %v174_v12 = vsel %vm150_vm0, 0.0, %v172_v6  ;;  %v175_v13 = vsel %vm150_vm0, %v172_v6, 0.0  ;;  %v1234_v14 = vpack.c.bf16 %v172_v6, %v148_v60  ;;  %v1461_v60 = vld [vmem:[#allocation2 + $0x50] sm:$0xff] }
  0xc2   :  { %v176_v16 = vrot.slane %v174_v12, 1  ;;  %v177_v17 = vrot.slane %v175_v13, 1  ;;  %v179_v18 = vrot.slane %v174_v12, 2  ;;  %v180_v19 = vrot.slane %v175_v13, 2 }
  0xc3   :  { %1235 = vmatmul.msk.bf16.vlgmr.msra.gmra.mxu1 %vm1233_vm5, %v1234_v14  ;;  %v182_v20 = vrot.slane %v174_v12, 3  ;;  %v183_v21 = vrot.slane %v175_v13, 3  ;;  %v185_v31 = vrot.slane %v174_v12, 4  ;;  %v186_v32 = vrot.slane %v175_v13, 4  ;;  %v1485_v12 = vld [vmem:[#allocation2 + $0x110] sm:$0xff] }
  0xc4   :  { %v178_v23 = vsel %vm157_vm2, %v176_v16, %v177_v17  ;;  %v181_v25 = vsel %vm161_vm3, %v179_v18, %v180_v19  ;;  %994 = vmatpush.bf16.msra.mxu1 %v1482_v42  ;;  %971 = vmatpush.bf16.msrb.mxu3 %v1461_v60 }
  0xc5   :  { %v189_v26 = vpack.c.bf16 %v178_v23, %v158_v22  ;;  %v190_v27 = vpack.c.bf16 %v181_v25, %v162_v24  ;;  %v184_v29 = vsel %vm165_vm4, %v182_v20, %v183_v21  ;;  %v187_v35 = vsel %vm169_vm6, %v185_v31, %v186_v32  ;;  %987 = vmatpush.bf16.msra.mxu0 %v1467_v8  ;;  %v1483_v21 = vld [vmem:[#allocation2 + $0x100] sm:$0xff] }
  0xc6   :  { %v191_v30 = vpack.c.bf16 %v184_v29, %v166_v28  ;;  %v192_v37 = vpack.c.bf16 %v187_v35, %v170_v36 }
  0xc7   :  { %539 = vmatmul.bf16.vlgmr.msra.gmra.mxu2 %v189_v26  ;;  %553 = vmatmul.bf16.vlgmr.msra.gmra.mxu3 %v190_v27 }
  0xc8   :  { %567 = vmatmul.bf16.vlgmr.msrb.gmra.mxu0 %v191_v30  ;;  %995 = vmatpush.bf16.msra.mxu1 %v1481_v46 }
  0xc9   :  { %1008 = vmatpush.bf16.msra.mxu2 %v1490_v55  ;;  %972 = vmatpush.bf16.msrb.mxu3 %v1460_v1 }
  0xcc   :  { %996 = vmatpush.bf16.msra.mxu1 %v1480_v50 }
  0xcd   :  { %1009 = vmatpush.bf16.msra.mxu2 %v1489_v59  ;;  %973 = vmatpush.bf16.msrb.mxu3 %v1459_v7 }
  0xd0   :  { %997 = vmatpush.bf16.msra.mxu1 %v1479_v54 }
  0xd1   :  { %1010 = vmatpush.bf16.msra.mxu2 %v1488_v0 }
  0xd3   :  { %581 = vmatmul.bf16.vlgmr.msrb.gmra.mxu1 %v192_v37 }
  0xd4   :  { %998 = vmatpush.bf16.msra.mxu1 %v1478_v58 }
  0xd5   :  { %1011 = vmatpush.bf16.msra.mxu2 %v1487_v4 }
  0xd8   :  { %999 = vmatpush.bf16.msra.mxu1 %v1477_v62 }
  0xd9   :  { %1012 = vmatpush.bf16.msra.mxu2 %v1486_v10 }
  0xdc   :  { %1000 = vmatpush.bf16.msra.mxu1 %v1476_v3 }
  0xdd   :  { %1013 = vmatpush.bf16.msra.mxu2 %v1485_v12 }
  0xe0   :  { %1001 = vmatpush.bf16.msra.mxu1 %v1475_v9  ;;  %v1496_v9 = vld [vmem:[%s1804_s6] ss:$0 sm:$0xff] }
  0xe1   :  { %1014 = vmatpush.bf16.msra.mxu2 %v1484_v15 }
  0xe5   :  { %1015 = vmatpush.bf16.msra.mxu2 %v1483_v21 }
 0x140   :  { %v526_v6 = vpop.f32.mrf.mxu1 }
 0x141   :  { %v527_v14 = vadd.f32 %v1495_v11, %v526_v6 }
 0x145   :  { %v568_v19 = vpop.f32.mrf.mxu0 }
 0x148   :  { %v528_v13 = vpop.f32.mrf.mxu1 }
 0x149   :  { %v529_v24 = vadd.f32 %v1495_v11, %v528_v13 }
 0x14a   :  { %v540_v16 = vpop.f32.mrf.mxu2  ;;  %v554_v17 = vpop.f32.mrf.mxu3 }
 0x14b   :  { %v541_v18 = vadd.f32 %v540_v16, %v527_v14 }
 0x14d   :  { %v555_v20 = vadd.f32 %v554_v17, %v541_v18  ;;  %v570_v31 = vpop.f32.mrf.mxu0 }
 0x14f   :  { %v569_v22 = vadd.f32 %v568_v19, %v555_v20 }
 0x150   :  { %v582_v23 = vpop.f32.mrf.mxu1 }
 0x151   :  { %v583_v25 = vadd.f32 %v582_v23, %v569_v22 }
 0x152   :  { %v542_v26 = vpop.f32.mrf.mxu2  ;;  %v556_v29 = vpop.f32.mrf.mxu3 }
 0x153   :  { %v587_v27 = vmax.f32 %v583_v25, 0.0  ;;  %v543_v28 = vadd.f32 %v542_v26, %v529_v24 }
 0x155   :  { %v557_v30 = vadd.f32 %v556_v29, %v543_v28  ;;  %v590_v32 = vrot.slane %v587_v27, 6 }
 0x157   :  { %v571_v33 = vadd.f32 %v570_v31, %v557_v30  ;;  %v592_v36 = vsel %vm150_vm0, 0.0, %v590_v32  ;;  %v593_v37 = vsel %vm150_vm0, %v590_v32, 0.0 }
 0x158   :  { %v584_v34 = vpop.f32.mrf.mxu1  ;;  %v597_v39 = vrot.slane %v592_v36, 2  ;;  %v598_v41 = vrot.slane %v593_v37, 2  ;;  %v600_v42 = vrot.slane %v592_v36, 3  ;;  %v601_v43 = vrot.slane %v593_v37, 3 }
 0x159   :  { %v585_v35 = vadd.f32 %v584_v34, %v571_v33  ;;  %v594_v44 = vrot.slane %v592_v36, 1  ;;  %v595_v48 = vrot.slane %v593_v37, 1  ;;  %v603_v2 = vrot.slane %v592_v36, 4 }
 0x15a   :  { %v599_v55 = vsel %vm161_vm3, %v597_v39, %v598_v41  ;;  %v602_v57 = vsel %vm165_vm4, %v600_v42, %v601_v43  ;;  %v604_v3 = vrot.slane %v593_v37, 4 }
 0x15b   :  { %v588_v38 = vmax.f32 %v585_v35, 0.0  ;;  %v596_v59 = vsel %vm157_vm2, %v594_v44, %v595_v48 }
 0x15c   :  { %v605_v6 = vsel %vm169_vm6, %v603_v2, %v604_v3 }
 0x15d   :  { %v607_v40 = vrot.slane %v588_v38, 6 }
 0x15f   :  { %v609_v45 = vsel %vm150_vm0, 0.0, %v607_v40  ;;  %v610_v46 = vsel %vm150_vm0, %v607_v40, 0.0  ;;  %v1399_v47 = vpack.c.bf16 %v607_v40, %v590_v32 }
 0x160   :  { %v614_v49 = vrot.slane %v609_v45, 2  ;;  %v615_v50 = vrot.slane %v610_v46, 2  ;;  %v617_v51 = vrot.slane %v609_v45, 3  ;;  %v618_v52 = vrot.slane %v610_v46, 3 }
 0x161   :  { %1400 = vmatmul.msk.bf16.vlgmr.msrb.gmra.mxu2 %vm1233_vm5, %v1399_v47  ;;  %v611_v53 = vrot.slane %v609_v45, 1  ;;  %v612_v54 = vrot.slane %v610_v46, 1  ;;  %v620_v0 = vrot.slane %v609_v45, 4  ;;  %v621_v1 = vrot.slane %v610_v46, 4 }
 0x162   :  { %v616_v56 = vsel %vm161_vm3, %v614_v49, %v615_v50  ;;  %v619_v58 = vsel %vm165_vm4, %v617_v51, %v618_v52 }
 0x163   :  { %v613_v5 = vsel %vm157_vm2, %v611_v53, %v612_v54  ;;  %v625_v60 = vpack.c.bf16 %v616_v56, %v599_v55  ;;  %v626_v61 = vpack.c.bf16 %v619_v58, %v602_v57  ;;  %v622_v4 = vsel %vm169_vm6, %v620_v0, %v621_v1 }
 0x164   :  { %v624_v62 = vpack.c.bf16 %v613_v5, %v596_v59  ;;  %v627_v7 = vpack.c.bf16 %v622_v4, %v605_v6 }
 0x165   :  { %988 = vmatmul.bf16.vlgmr.msra.gmra.mxu0 %v625_v60  ;;  %1002 = vmatmul.bf16.vlgmr.msra.gmra.mxu1 %v626_v61 }
 0x166   :  { %974 = vmatmul.bf16.vlgmr.msrb.gmra.mxu3 %v624_v62 }
 0x171   :  { %1016 = vmatmul.bf16.vlgmr.msra.gmra.mxu2 %v627_v7 }
 0x1e2   :  { %v989_v13 = vpop.f32.mrf.mxu0  ;;  %v1003_v16 = vpop.f32.mrf.mxu1 }
 0x1e4   :  { %v961_v8 = vpop.f32.mrf.mxu2 }
 0x1e5   :  { %v962_v10 = vadd.f32 %v1496_v9, %v961_v8 }
 0x1e9   :  { %v975_v11 = vpop.f32.mrf.mxu3 }
 0x1ea   :  { %v976_v12 = vadd.f32 %v975_v11, %v962_v10  ;;  %v991_v22 = vpop.f32.mrf.mxu0  ;;  %v1005_v25 = vpop.f32.mrf.mxu1 }
 0x1ec   :  { %v963_v14 = vpop.f32.mrf.mxu2  ;;  %v990_v15 = vadd.f32 %v989_v13, %v976_v12 }
 0x1ed   :  { %v964_v17 = vadd.f32 %v1496_v9, %v963_v14 }
 0x1ee   :  { %v1004_v20 = vadd.f32 %v1003_v16, %v990_v15 }
 0x1f1   :  { %v977_v18 = vpop.f32.mrf.mxu3 }
 0x1f2   :  { %v978_v19 = vadd.f32 %v977_v18, %v964_v17 }
 0x1f4   :  { %v1017_v63 = vpop.f32.mrf.mxu2  ;;  %v992_v23 = vadd.f32 %v991_v22, %v978_v19 }
 0x1f5   :  { %v1018_v21 = vadd.f32 %v1017_v63, %v1004_v20 }
 0x1f6   :  { %v1006_v26 = vadd.f32 %v1005_v25, %v992_v23 }
 0x1f7   :  { %v1022_v24 = vmax.f32 %v1018_v21, 0.0 }
 0x1f9   :  { %1024 = vst [vmem:[%s1805_s7] sm:$0xff] %v1022_v24 }
 0x1fc   :  { %v1019_v27 = vpop.f32.mrf.mxu2 }
 0x1fd   :  { %v1020_v28 = vadd.f32 %v1019_v27, %v1006_v26 }
 0x1ff   :  { %v1023_v29 = vmax.f32 %v1020_v28, 0.0 }
 0x201   :  { %1025 = vst [vmem:[%s1805_s7 + $0x8] sm:$0xff] %v1023_v29 }
 0x202   :  { %1030 = vsyncpa [#allocation3], 1 }

</bundles_post_ra>
